<compile_context>
chip_gen: v6e
topology: v6e:2x2x1
jax: 0.10.0
libtpu: 0.0.40
codegen_flags: <defaults>
</compile_context>

<pallas_src>
import jax
import jax.numpy as jnp
from jax import lax
from jax.experimental import pallas as pl
from jax.experimental.pallas import tpu as pltpu


# ---------------------------------------------------------------------------
# In-kernel helpers (only ops with guaranteed Mosaic lowerings).
# ---------------------------------------------------------------------------
def _erf(x):
    # Abramowitz & Stegun 7.1.26 erf approximation (~1.5e-7 abs error); used
    # because a native lax.erf lowering is not guaranteed in Mosaic.
    a1, a2, a3, a4, a5 = 0.254829592, -0.284496736, 1.421413741, -1.453152027, 1.061405429
    p = 0.3275911
    sgn = jnp.where(x >= 0.0, 1.0, -1.0)
    ax = jnp.abs(x)
    t = 1.0 / (1.0 + p * ax)
    poly = ((((a5 * t + a4) * t + a3) * t + a2) * t + a1) * t
    return sgn * (1.0 - poly * jnp.exp(-ax * ax))


def _gelu_exact(x):
    # nn.GELU() default (exact, erf-based); note _gelu_exact(0) == 0 exactly.
    return 0.5 * x * (1.0 + _erf(x * 0.7071067811865476))


def _sigmoid(x):
    return 1.0 / (1.0 + jnp.exp(-x))


# ---------------------------------------------------------------------------
# Kernel (everything transposed: rows = features/channels, lanes = spatial)
# ---------------------------------------------------------------------------
def parallel_conv_pa_kernel(xT_ref, p5T_ref, mask_ref,
                            w1T_ref, b1_ref,
                            wccT_ref, bcc_ref, scc_ref, tcc_ref,
                            wsmT_ref, bsm_ref,
                            out_ref):
    C = xT_ref.shape[0]
    xT = xT_ref[...]                                            # (C, tm)
    p5T = p5T_ref[...]                                          # (25C, tm)
    mask = mask_ref[...]                                        # (9, tm)

    # --- PA branch: sigmoid(conv1x1(x)) * x --------------------------------
    pa = _sigmoid(jnp.dot(w1T_ref[...], xT,
                          preferred_element_type=jnp.float32)
                  + b1_ref[...]) * xT                           # (C_out, tm)

    # --- fused [3x3 | 5x5 | zero] conv -> BN -> GELU -------------------------
    # wcc rows: [0:C3)=w3 (zero-padded into the 5x5 frame), [C3:2C3)=w5,
    # [2C3:C_out)=0 (with scale/shift 0 -> gelu(0) == 0).
    ycc = jnp.dot(wccT_ref[...], p5T,
                  preferred_element_type=jnp.float32) + bcc_ref[...]
    ycc = _gelu_exact(ycc * scc_ref[...] + tcc_ref[...])        # (C_out, tm)

    # --- 3x3 max-pool from the 9 centre taps of the 5x5 patches -------------
    # Additive -inf border mask reproduces MaxPool2d's padding semantics
    # (5x5 patches are zero-padded for the conv, so a mask is required).
    pool = None
    k = 0
    for dh in (1, 2, 3):
        for dw in (1, 2, 3):
            tap = dh * 5 + dw
            v = p5T[tap * C:(tap + 1) * C, :] + mask[k:k + 1, :]
            pool = v if pool is None else jnp.maximum(pool, v)
            k += 1

    # --- sizeMatching 1x1 (already zero-padded to C_out rows) ----------------
    y3 = jnp.dot(wsmT_ref[...], pool,
                 preferred_element_type=jnp.float32) + bsm_ref[...]   # (C_out, tm)

    # concat([y1, y2, y3]) is an add of channel-disjoint terms; then + PA.
    out_ref[...] = ycc + y3 + pa


# ---------------------------------------------------------------------------
# Glue: im2col patch extraction + pallas_call wrapper
# ---------------------------------------------------------------------------
def _im2col(x_nhwc, k, pad_value):
    """x: (N,H,W,C) -> (N,H,W,k*k,C), stride 1, 'same' padding of k//2."""
    N, H, W, C = x_nhwc.shape
    p = k // 2
    xp = jnp.pad(x_nhwc, ((0, 0), (p, p), (p, p), (0, 0)),
                 constant_values=pad_value)
    patches = []
    for dh in range(k):
        for dw in range(k):
            patches.append(xp[:, dh:dh + H, dw:dw + W, :])
    return jnp.stack(patches, axis=3)  # (N, H, W, k*k, C)


def parallel_conv_pa(x_nchw, params, tm=256):
    N, C, H, W = x_nchw.shape
    C3 = params["w3"].shape[1]
    C_out = 3 * C3
    assert params["w1"].shape[1] == C_out == C, \
        "PA broadcasting requires out_channels == in_channels == 3*(in//3)"

    x = jnp.transpose(x_nchw, (0, 2, 3, 1)).astype(jnp.float32)       # NHWC
    M = N * H * W
    if tm > M:
        tm = M
    assert M % tm == 0 and (tm % 128 == 0 or tm == M)

    # --- transposed (lane-dense) inputs -------------------------------------
    xT = x.reshape(M, C).T                                            # (C, M)
    p5T = _im2col(x, 5, 0.0).reshape(M, 25 * C).T                     # (25C, M)

    # Pool border-validity additive mask (9, M): 0 where the 3x3 neighbour is
    # inside the image, -inf where it falls on padding.
    r = jnp.arange(M)
    hh = (r // W) % H
    ww = r % W
    rows = []
    for a in (-1, 0, 1):
        for b in (-1, 0, 1):
            valid = (hh + a >= 0) & (hh + a < H) & (ww + b >= 0) & (ww + b < W)
            rows.append(jnp.where(valid, 0.0, -jnp.inf).astype(jnp.float32))
    maskT = jnp.stack(rows, axis=0)                                   # (9, M)

    # --- loop-invariant weight folding (done once, in the wrapper) -----------
    # w3 zero-padded into the 5x5 tap frame.
    w3p = jnp.pad(params["w3"].reshape(3, 3, C, C3),
                  ((1, 1), (1, 1), (0, 0), (0, 0))).reshape(25 * C, C3)
    zero_cols = jnp.zeros((25 * C, C3), jnp.float32)
    wccT = jnp.concatenate([w3p, params["w5"], zero_cols], axis=1).T  # (C_out, 25C)

    zrow = jnp.zeros((1, C3), jnp.float32)
    bcc = jnp.concatenate([params["b3"], params["b5"], zrow], axis=1).T   # (C_out, 1)
    scc = jnp.concatenate([params["s1"], params["s2"], zrow], axis=1).T   # (C_out, 1)
    tcc = jnp.concatenate([params["t1"], params["t2"], zrow], axis=1).T   # (C_out, 1)

    # sizeMatching 1x1 padded to C_out rows (zeros in the y1/y2 channel slots).
    wsmT = jnp.concatenate([jnp.zeros((2 * C3, C), jnp.float32),
                            params["wsm"].T], axis=0)                 # (C_out, C)
    bsm = jnp.concatenate([jnp.zeros((1, 2 * C3), jnp.float32),
                           params["bsm"]], axis=1).T                  # (C_out, 1)

    w1T = params["w1"].T                                              # (C_out, C)
    b1 = params["b1"].T                                               # (C_out, 1)

    col = lambda i: (0, i)
    full = lambda i: (0, 0)

    outT = pl.pallas_call(
        parallel_conv_pa_kernel,
        out_shape=jax.ShapeDtypeStruct((C_out, M), jnp.float32),
        grid_spec=pltpu.PrefetchScalarGridSpec(
            num_scalar_prefetch=0,
            grid=(M // tm,),
            in_specs=[
                pl.BlockSpec((C, tm), col),            # x^T
                pl.BlockSpec((25 * C, tm), col),       # 5x5 patches^T
                pl.BlockSpec((9, tm), col),            # pool border mask
                pl.BlockSpec((C_out, C), full),        # w1^T (1x1 PA)
                pl.BlockSpec((C_out, 1), full),        # b1
                pl.BlockSpec((C_out, 25 * C), full),   # fused conv weights^T
                pl.BlockSpec((C_out, 1), full),        # fused conv bias
                pl.BlockSpec((C_out, 1), full),        # fused BN scale
                pl.BlockSpec((C_out, 1), full),        # fused BN shift
                pl.BlockSpec((C_out, C), full),        # sizeMatching w^T (padded)
                pl.BlockSpec((C_out, 1), full),        # sizeMatching b (padded)
            ],
            out_specs=pl.BlockSpec((C_out, tm), col),
        ),
        compiler_params=pltpu.CompilerParams(
            dimension_semantics=("parallel",)),
    )(xT, p5T, maskT, w1T, b1, wccT, bcc, scc, tcc, wsmT, bsm)

    return outT.reshape(C_out, N, H, W).transpose(1, 0, 2, 3)         # NCHW


# ---------------------------------------------------------------------------
# Pure-JAX reference (NCHW, lax.conv) for correctness checking
# ---------------------------------------------------------------------------
def reference(x_nchw, params):
    C = x_nchw.shape[1]

    def conv(x, wmat, b, k):
        # wmat: (k*k*C, Co), flattened in (dh, dw, ci) order -> OIHW
        w = wmat.reshape(k, k, C, -1).transpose(3, 2, 0, 1)
        out = lax.conv_general_dilated(
            x, w, window_strides=(1, 1), padding=[(k // 2, k // 2)] * 2,
            dimension_numbers=('NCHW', 'OIHW', 'NCHW'))
        return out + b.reshape(1, -1, 1, 1)

    pa = jax.nn.sigmoid(conv(x_nchw, params["w1"], params["b1"], 1)) * x_nchw
    y1 = conv(x_nchw, params["w3"], params["b3"], 3)
    y1 = jax.nn.gelu(y1 * params["s1"].reshape(1, -1, 1, 1)
                     + params["t1"].reshape(1, -1, 1, 1), approximate=False)
    y2 = conv(x_nchw, params["w5"], params["b5"], 5)
    y2 = jax.nn.gelu(y2 * params["s2"].reshape(1, -1, 1, 1)
                     + params["t2"].reshape(1, -1, 1, 1), approximate=False)
    xp = lax.reduce_window(x_nchw, -jnp.inf, lax.max, (1, 1, 3, 3),
                           (1, 1, 1, 1), [(0, 0), (0, 0), (1, 1), (1, 1)])
    y3 = conv(xp, params["wsm"], params["bsm"], 1)
    return jnp.concatenate([y1, y2, y3], axis=1) + pa


# ---------------------------------------------------------------------------
if __name__ == "__main__":
    key = jax.random.PRNGKey(0)
    N, C_in, H, W = 2, 6, 16, 16          # in_channels divisible by 3
    C_out_pa = C_in                        # required for PA broadcast & final add
    C3 = C_in // 3
    eps = 1e-5

    ks = jax.random.split(key, 13)
    params = dict(
        w1=0.2 * jax.random.normal(ks[0], (C_in, C_out_pa), jnp.float32),
        b1=0.1 * jax.random.normal(ks[1], (1, C_out_pa), jnp.float32),
        w3=0.2 * jax.random.normal(ks[2], (9 * C_in, C3), jnp.float32),
        b3=0.1 * jax.random.normal(ks[3], (1, C3), jnp.float32),
        w5=0.2 * jax.random.normal(ks[4], (25 * C_in, C3), jnp.float32),
        b5=0.1 * jax.random.normal(ks[5], (1, C3), jnp.float32),
        wsm=0.2 * jax.random.normal(ks[6], (C_in, C3), jnp.float32),
        bsm=0.1 * jax.random.normal(ks[7], (1, C3), jnp.float32),
    )
    # BatchNorm (inference): running_mean=0, running_var=1, learned gamma/beta
    gamma1 = 1.0 + 0.1 * jax.random.normal(ks[8], (C3,), jnp.float32)
    beta1 = 0.1 * jax.random.normal(ks[9], (C3,), jnp.float32)
    gamma2 = 1.0 + 0.1 * jax.random.normal(ks[10], (C3,), jnp.float32)
    beta2 = 0.1 * jax.random.normal(ks[11], (C3,), jnp.float32)
    params["s1"] = (gamma1 / jnp.sqrt(1.0 + eps)).reshape(1, C3)
    params["t1"] = beta1.reshape(1, C3)
    params["s2"] = (gamma2 / jnp.sqrt(1.0 + eps)).reshape(1, C3)
    params["t2"] = beta2.reshape(1, C3)

    x = jax.random.normal(ks[12], (N, C_in, H, W), jnp.float32)

    out = parallel_conv_pa(x, params)
    out = jax.block_until_ready(out)

    ref = jax.block_until_ready(reference(x, params))
    assert out.shape == ref.shape == (N, 3 * C3, H, W)
    if not jnp.allclose(out, ref, atol=1e-3, rtol=1e-3):
        raise AssertionError("Pallas kernel does not match reference")

    print("KERNEL_OK")
</pallas_src>

<mosaic_0001>
module attributes {stable_mosaic.version = 11 : i64} {
  func.func @parallel_conv_pa_kernel(%arg0: i32, %arg1: memref<6x256xf32, #tpu.memory_space<vmem>>, %arg2: memref<150x256xf32, #tpu.memory_space<vmem>>, %arg3: memref<9x256xf32, #tpu.memory_space<vmem>>, %arg4: memref<6x6xf32, #tpu.memory_space<vmem>>, %arg5: memref<6x1xf32, #tpu.memory_space<vmem>>, %arg6: memref<6x150xf32, #tpu.memory_space<vmem>>, %arg7: memref<6x1xf32, #tpu.memory_space<vmem>>, %arg8: memref<6x1xf32, #tpu.memory_space<vmem>>, %arg9: memref<6x1xf32, #tpu.memory_space<vmem>>, %arg10: memref<6x6xf32, #tpu.memory_space<vmem>>, %arg11: memref<6x1xf32, #tpu.memory_space<vmem>>, %arg12: memref<6x256xf32, #tpu.memory_space<vmem>>) attributes {dimension_semantics = [#tpu.dimension_semantics<parallel>], iteration_bounds = array<i64: 2>, scalar_prefetch = 0 : i64, scratch_operands = 0 : i64, tpu.core_type = #tpu.core_type<tc>, window_params = [{transform_indices = @transform_0, window_bounds = array<i64: 6, 256>}, {transform_indices = @transform_1, window_bounds = array<i64: 150, 256>}, {transform_indices = @transform_2, window_bounds = array<i64: 9, 256>}, {pipeline_mode = #tpu.pipeline_mode<synchronous>, transform_indices = @transform_3, window_bounds = array<i64: 6, 6>}, {pipeline_mode = #tpu.pipeline_mode<synchronous>, transform_indices = @transform_4, window_bounds = array<i64: 6, 1>}, {pipeline_mode = #tpu.pipeline_mode<synchronous>, transform_indices = @transform_5, window_bounds = array<i64: 6, 150>}, {pipeline_mode = #tpu.pipeline_mode<synchronous>, transform_indices = @transform_6, window_bounds = array<i64: 6, 1>}, {pipeline_mode = #tpu.pipeline_mode<synchronous>, transform_indices = @transform_7, window_bounds = array<i64: 6, 1>}, {pipeline_mode = #tpu.pipeline_mode<synchronous>, transform_indices = @transform_8, window_bounds = array<i64: 6, 1>}, {pipeline_mode = #tpu.pipeline_mode<synchronous>, transform_indices = @transform_9, window_bounds = array<i64: 6, 6>}, {pipeline_mode = #tpu.pipeline_mode<synchronous>, transform_indices = @transform_10, window_bounds = array<i64: 6, 1>}, {transform_indices = @transform_11, window_bounds = array<i64: 6, 256>}]} {
    %c0 = arith.constant 0 : index
    %c0_0 = arith.constant 0 : index
    %0 = vector.load %arg1[%c0, %c0_0] : memref<6x256xf32, #tpu.memory_space<vmem>>, vector<6x256xf32>
    %c0_1 = arith.constant 0 : index
    %c0_2 = arith.constant 0 : index
    %1 = vector.load %arg2[%c0_1, %c0_2] : memref<150x256xf32, #tpu.memory_space<vmem>>, vector<150x256xf32>
    %c0_3 = arith.constant 0 : index
    %c0_4 = arith.constant 0 : index
    %2 = vector.load %arg3[%c0_3, %c0_4] : memref<9x256xf32, #tpu.memory_space<vmem>>, vector<9x256xf32>
    %c0_5 = arith.constant 0 : index
    %c0_6 = arith.constant 0 : index
    %3 = vector.load %arg4[%c0_5, %c0_6] : memref<6x6xf32, #tpu.memory_space<vmem>>, vector<6x6xf32>
    %cst = arith.constant dense<0.000000e+00> : vector<6x256xf32>
    %4 = tpu.matmul %3, %0, %cst {dimension_numbers = #tpu.dot_dimension_numbers<[1], [0], [0], [1], [0, 0, 1, 1], [], []>} : vector<6x6xf32>, vector<6x256xf32>, vector<6x256xf32> -> vector<6x256xf32>
    %c0_7 = arith.constant 0 : index
    %c0_8 = arith.constant 0 : index
    %5 = vector.load %arg5[%c0_7, %c0_8] : memref<6x1xf32, #tpu.memory_space<vmem>>, vector<6x1xf32>
    %6 = vector.broadcast %5 : vector<6x1xf32> to vector<6x256xf32>
    %7 = arith.addf %4, %6 : vector<6x256xf32>
    %cst_9 = arith.constant 0.000000e+00 : f32
    %8 = vector.broadcast %cst_9 : f32 to vector<6x256xf32>
    %9 = arith.subf %8, %7 : vector<6x256xf32>
    %10 = math.exp %9 : vector<6x256xf32>
    %cst_10 = arith.constant 1.000000e+00 : f32
    %11 = vector.broadcast %cst_10 : f32 to vector<6x256xf32>
    %12 = arith.addf %11, %10 : vector<6x256xf32>
    %cst_11 = arith.constant 1.000000e+00 : f32
    %13 = vector.broadcast %cst_11 : f32 to vector<6x256xf32>
    %14 = arith.divf %13, %12 : vector<6x256xf32>
    %15 = arith.mulf %14, %0 : vector<6x256xf32>
    %c0_12 = arith.constant 0 : index
    %c0_13 = arith.constant 0 : index
    %16 = vector.load %arg6[%c0_12, %c0_13] : memref<6x150xf32, #tpu.memory_space<vmem>>, vector<6x150xf32>
    %cst_14 = arith.constant dense<0.000000e+00> : vector<6x256xf32>
    %17 = tpu.matmul %16, %1, %cst_14 {dimension_numbers = #tpu.dot_dimension_numbers<[1], [0], [0], [1], [0, 0, 1, 1], [], []>} : vector<6x150xf32>, vector<150x256xf32>, vector<6x256xf32> -> vector<6x256xf32>
    %c0_15 = arith.constant 0 : index
    %c0_16 = arith.constant 0 : index
    %18 = vector.load %arg7[%c0_15, %c0_16] : memref<6x1xf32, #tpu.memory_space<vmem>>, vector<6x1xf32>
    %19 = vector.broadcast %18 : vector<6x1xf32> to vector<6x256xf32>
    %20 = arith.addf %17, %19 : vector<6x256xf32>
    %c0_17 = arith.constant 0 : index
    %c0_18 = arith.constant 0 : index
    %21 = vector.load %arg8[%c0_17, %c0_18] : memref<6x1xf32, #tpu.memory_space<vmem>>, vector<6x1xf32>
    %22 = vector.broadcast %21 : vector<6x1xf32> to vector<6x256xf32>
    %23 = arith.mulf %20, %22 : vector<6x256xf32>
    %c0_19 = arith.constant 0 : index
    %c0_20 = arith.constant 0 : index
    %24 = vector.load %arg9[%c0_19, %c0_20] : memref<6x1xf32, #tpu.memory_space<vmem>>, vector<6x1xf32>
    %25 = vector.broadcast %24 : vector<6x1xf32> to vector<6x256xf32>
    %26 = arith.addf %23, %25 : vector<6x256xf32>
    %cst_21 = arith.constant 5.000000e-01 : f32
    %27 = vector.broadcast %cst_21 : f32 to vector<6x256xf32>
    %28 = arith.mulf %27, %26 : vector<6x256xf32>
    %cst_22 = arith.constant 0.707106769 : f32
    %29 = vector.broadcast %cst_22 : f32 to vector<6x256xf32>
    %30 = arith.mulf %26, %29 : vector<6x256xf32>
    %cst_23 = arith.constant 0.000000e+00 : f32
    %31 = vector.broadcast %cst_23 : f32 to vector<6x256xf32>
    %32 = arith.cmpf oge, %30, %31 : vector<6x256xf32>
    %cst_24 = arith.constant 1.000000e+00 : f32
    %cst_25 = arith.constant -1.000000e+00 : f32
    %33 = vector.broadcast %cst_24 : f32 to vector<6x256xf32>
    %34 = vector.broadcast %cst_25 : f32 to vector<6x256xf32>
    %35 = arith.select %32, %33, %34 : vector<6x256xi1>, vector<6x256xf32>
    %36 = math.absf %30 : vector<6x256xf32>
    %cst_26 = arith.constant 0.327591091 : f32
    %37 = vector.broadcast %cst_26 : f32 to vector<6x256xf32>
    %38 = arith.mulf %37, %36 : vector<6x256xf32>
    %cst_27 = arith.constant 1.000000e+00 : f32
    %39 = vector.broadcast %cst_27 : f32 to vector<6x256xf32>
    %40 = arith.addf %39, %38 : vector<6x256xf32>
    %cst_28 = arith.constant 1.000000e+00 : f32
    %41 = vector.broadcast %cst_28 : f32 to vector<6x256xf32>
    %42 = arith.divf %41, %40 : vector<6x256xf32>
    %cst_29 = arith.constant 1.06140542 : f32
    %43 = vector.broadcast %cst_29 : f32 to vector<6x256xf32>
    %44 = arith.mulf %43, %42 : vector<6x256xf32>
    %cst_30 = arith.constant -1.45315206 : f32
    %45 = vector.broadcast %cst_30 : f32 to vector<6x256xf32>
    %46 = arith.addf %44, %45 : vector<6x256xf32>
    %47 = arith.mulf %46, %42 : vector<6x256xf32>
    %cst_31 = arith.constant 1.42141378 : f32
    %48 = vector.broadcast %cst_31 : f32 to vector<6x256xf32>
    %49 = arith.addf %47, %48 : vector<6x256xf32>
    %50 = arith.mulf %49, %42 : vector<6x256xf32>
    %cst_32 = arith.constant -0.284496725 : f32
    %51 = vector.broadcast %cst_32 : f32 to vector<6x256xf32>
    %52 = arith.addf %50, %51 : vector<6x256xf32>
    %53 = arith.mulf %52, %42 : vector<6x256xf32>
    %cst_33 = arith.constant 0.254829586 : f32
    %54 = vector.broadcast %cst_33 : f32 to vector<6x256xf32>
    %55 = arith.addf %53, %54 : vector<6x256xf32>
    %56 = arith.mulf %55, %42 : vector<6x256xf32>
    %cst_34 = arith.constant 0.000000e+00 : f32
    %57 = vector.broadcast %cst_34 : f32 to vector<6x256xf32>
    %58 = arith.subf %57, %36 : vector<6x256xf32>
    %59 = arith.mulf %58, %36 : vector<6x256xf32>
    %60 = math.exp %59 : vector<6x256xf32>
    %61 = arith.mulf %56, %60 : vector<6x256xf32>
    %cst_35 = arith.constant 1.000000e+00 : f32
    %62 = vector.broadcast %cst_35 : f32 to vector<6x256xf32>
    %63 = arith.subf %62, %61 : vector<6x256xf32>
    %64 = arith.mulf %35, %63 : vector<6x256xf32>
    %cst_36 = arith.constant 1.000000e+00 : f32
    %65 = vector.broadcast %cst_36 : f32 to vector<6x256xf32>
    %66 = arith.addf %65, %64 : vector<6x256xf32>
    %67 = arith.mulf %28, %66 : vector<6x256xf32>
    %68 = vector.extract_strided_slice %1 {offsets = [36, 0], sizes = [6, 256], strides = [1, 1]} : vector<150x256xf32> to vector<6x256xf32>
    %69 = vector.extract_strided_slice %2 {offsets = [0, 0], sizes = [1, 256], strides = [1, 1]} : vector<9x256xf32> to vector<1x256xf32>
    %70 = vector.broadcast %69 : vector<1x256xf32> to vector<6x256xf32>
    %71 = arith.addf %68, %70 : vector<6x256xf32>
    %72 = vector.extract_strided_slice %1 {offsets = [42, 0], sizes = [6, 256], strides = [1, 1]} : vector<150x256xf32> to vector<6x256xf32>
    %73 = vector.extract_strided_slice %2 {offsets = [1, 0], sizes = [1, 256], strides = [1, 1]} : vector<9x256xf32> to vector<1x256xf32>
    %74 = vector.broadcast %73 : vector<1x256xf32> to vector<6x256xf32>
    %75 = arith.addf %72, %74 : vector<6x256xf32>
    %76 = arith.maximumf %71, %75 : vector<6x256xf32>
    %77 = vector.extract_strided_slice %1 {offsets = [48, 0], sizes = [6, 256], strides = [1, 1]} : vector<150x256xf32> to vector<6x256xf32>
    %78 = vector.extract_strided_slice %2 {offsets = [2, 0], sizes = [1, 256], strides = [1, 1]} : vector<9x256xf32> to vector<1x256xf32>
    %79 = vector.broadcast %78 : vector<1x256xf32> to vector<6x256xf32>
    %80 = arith.addf %77, %79 : vector<6x256xf32>
    %81 = arith.maximumf %76, %80 : vector<6x256xf32>
    %82 = vector.extract_strided_slice %1 {offsets = [66, 0], sizes = [6, 256], strides = [1, 1]} : vector<150x256xf32> to vector<6x256xf32>
    %83 = vector.extract_strided_slice %2 {offsets = [3, 0], sizes = [1, 256], strides = [1, 1]} : vector<9x256xf32> to vector<1x256xf32>
    %84 = vector.broadcast %83 : vector<1x256xf32> to vector<6x256xf32>
    %85 = arith.addf %82, %84 : vector<6x256xf32>
    %86 = arith.maximumf %81, %85 : vector<6x256xf32>
    %87 = vector.extract_strided_slice %1 {offsets = [72, 0], sizes = [6, 256], strides = [1, 1]} : vector<150x256xf32> to vector<6x256xf32>
    %88 = vector.extract_strided_slice %2 {offsets = [4, 0], sizes = [1, 256], strides = [1, 1]} : vector<9x256xf32> to vector<1x256xf32>
    %89 = vector.broadcast %88 : vector<1x256xf32> to vector<6x256xf32>
    %90 = arith.addf %87, %89 : vector<6x256xf32>
    %91 = arith.maximumf %86, %90 : vector<6x256xf32>
    %92 = vector.extract_strided_slice %1 {offsets = [78, 0], sizes = [6, 256], strides = [1, 1]} : vector<150x256xf32> to vector<6x256xf32>
    %93 = vector.extract_strided_slice %2 {offsets = [5, 0], sizes = [1, 256], strides = [1, 1]} : vector<9x256xf32> to vector<1x256xf32>
    %94 = vector.broadcast %93 : vector<1x256xf32> to vector<6x256xf32>
    %95 = arith.addf %92, %94 : vector<6x256xf32>
    %96 = arith.maximumf %91, %95 : vector<6x256xf32>
    %97 = vector.extract_strided_slice %1 {offsets = [96, 0], sizes = [6, 256], strides = [1, 1]} : vector<150x256xf32> to vector<6x256xf32>
    %98 = vector.extract_strided_slice %2 {offsets = [6, 0], sizes = [1, 256], strides = [1, 1]} : vector<9x256xf32> to vector<1x256xf32>
    %99 = vector.broadcast %98 : vector<1x256xf32> to vector<6x256xf32>
    %100 = arith.addf %97, %99 : vector<6x256xf32>
    %101 = arith.maximumf %96, %100 : vector<6x256xf32>
    %102 = vector.extract_strided_slice %1 {offsets = [102, 0], sizes = [6, 256], strides = [1, 1]} : vector<150x256xf32> to vector<6x256xf32>
    %103 = vector.extract_strided_slice %2 {offsets = [7, 0], sizes = [1, 256], strides = [1, 1]} : vector<9x256xf32> to vector<1x256xf32>
    %104 = vector.broadcast %103 : vector<1x256xf32> to vector<6x256xf32>
    %105 = arith.addf %102, %104 : vector<6x256xf32>
    %106 = arith.maximumf %101, %105 : vector<6x256xf32>
    %107 = vector.extract_strided_slice %1 {offsets = [108, 0], sizes = [6, 256], strides = [1, 1]} : vector<150x256xf32> to vector<6x256xf32>
    %108 = vector.extract_strided_slice %2 {offsets = [8, 0], sizes = [1, 256], strides = [1, 1]} : vector<9x256xf32> to vector<1x256xf32>
    %109 = vector.broadcast %108 : vector<1x256xf32> to vector<6x256xf32>
    %110 = arith.addf %107, %109 : vector<6x256xf32>
    %111 = arith.maximumf %106, %110 : vector<6x256xf32>
    %c0_37 = arith.constant 0 : index
    %c0_38 = arith.constant 0 : index
    %112 = vector.load %arg10[%c0_37, %c0_38] : memref<6x6xf32, #tpu.memory_space<vmem>>, vector<6x6xf32>
    %cst_39 = arith.constant dense<0.000000e+00> : vector<6x256xf32>
    %113 = tpu.matmul %112, %111, %cst_39 {dimension_numbers = #tpu.dot_dimension_numbers<[1], [0], [0], [1], [0, 0, 1, 1], [], []>} : vector<6x6xf32>, vector<6x256xf32>, vector<6x256xf32> -> vector<6x256xf32>
    %c0_40 = arith.constant 0 : index
    %c0_41 = arith.constant 0 : index
    %114 = vector.load %arg11[%c0_40, %c0_41] : memref<6x1xf32, #tpu.memory_space<vmem>>, vector<6x1xf32>
    %115 = vector.broadcast %114 : vector<6x1xf32> to vector<6x256xf32>
    %116 = arith.addf %113, %115 : vector<6x256xf32>
    %117 = arith.addf %67, %116 : vector<6x256xf32>
    %118 = arith.addf %117, %15 : vector<6x256xf32>
    %c0_42 = arith.constant 0 : index
    %c0_43 = arith.constant 0 : index
    %119 = vector.load %arg12[%c0_42, %c0_43] : memref<6x256xf32, #tpu.memory_space<vmem>>, vector<6x256xf32>
    tpu.vector_store %arg12[%c0_42, %c0_43], %118 {strides = array<i32>} : memref<6x256xf32, #tpu.memory_space<vmem>>, vector<6x256xf32>,
    return
  }
  func.func @transform_0(%arg0: i32) -> (i32, i32) {
    %c0_i32 = arith.constant 0 : i32
    %c0_i32_0 = arith.constant 0 : i32
    return %c0_i32, %arg0 : i32, i32
  }
  func.func @transform_1(%arg0: i32) -> (i32, i32) {
    %c0_i32 = arith.constant 0 : i32
    %c0_i32_0 = arith.constant 0 : i32
    return %c0_i32, %arg0 : i32, i32
  }
  func.func @transform_2(%arg0: i32) -> (i32, i32) {
    %c0_i32 = arith.constant 0 : i32
    %c0_i32_0 = arith.constant 0 : i32
    return %c0_i32, %arg0 : i32, i32
  }
  func.func @transform_3(%arg0: i32) -> (i32, i32) {
    %c0_i32 = arith.constant 0 : i32
    %c0_i32_0 = arith.constant 0 : i32
    %c0_i32_1 = arith.constant 0 : i32
    return %c0_i32, %c0_i32_0 : i32, i32
  }
  func.func @transform_4(%arg0: i32) -> (i32, i32) {
    %c0_i32 = arith.constant 0 : i32
    %c0_i32_0 = arith.constant 0 : i32
    %c0_i32_1 = arith.constant 0 : i32
    return %c0_i32, %c0_i32_0 : i32, i32
  }
  func.func @transform_5(%arg0: i32) -> (i32, i32) {
    %c0_i32 = arith.constant 0 : i32
    %c0_i32_0 = arith.constant 0 : i32
    %c0_i32_1 = arith.constant 0 : i32
    return %c0_i32, %c0_i32_0 : i32, i32
  }
  func.func @transform_6(%arg0: i32) -> (i32, i32) {
    %c0_i32 = arith.constant 0 : i32
    %c0_i32_0 = arith.constant 0 : i32
    %c0_i32_1 = arith.constant 0 : i32
    return %c0_i32, %c0_i32_0 : i32, i32
  }
  func.func @transform_7(%arg0: i32) -> (i32, i32) {
    %c0_i32 = arith.constant 0 : i32
    %c0_i32_0 = arith.constant 0 : i32
    %c0_i32_1 = arith.constant 0 : i32
    return %c0_i32, %c0_i32_0 : i32, i32
  }
  func.func @transform_8(%arg0: i32) -> (i32, i32) {
    %c0_i32 = arith.constant 0 : i32
    %c0_i32_0 = arith.constant 0 : i32
    %c0_i32_1 = arith.constant 0 : i32
    return %c0_i32, %c0_i32_0 : i32, i32
  }
  func.func @transform_9(%arg0: i32) -> (i32, i32) {
    %c0_i32 = arith.constant 0 : i32
    %c0_i32_0 = arith.constant 0 : i32
    %c0_i32_1 = arith.constant 0 : i32
    return %c0_i32, %c0_i32_0 : i32, i32
  }
  func.func @transform_10(%arg0: i32) -> (i32, i32) {
    %c0_i32 = arith.constant 0 : i32
    %c0_i32_0 = arith.constant 0 : i32
    %c0_i32_1 = arith.constant 0 : i32
    return %c0_i32, %c0_i32_0 : i32, i32
  }
  func.func @transform_11(%arg0: i32) -> (i32, i32) {
    %c0_i32 = arith.constant 0 : i32
    %c0_i32_0 = arith.constant 0 : i32
    return %c0_i32, %arg0 : i32, i32
  }
}

</mosaic_0001>

<bundles_post_ra>
// kernel: tpu_custom_call.1
= control target key start
LH: loop header
LB: loop body
LE: loop exit
PB: predicated region body
PF: predicated region fallthrough
CT: control target
= control target key end

     0   :  { %s1977_s0 = inlined_call_operand.vmem [shape: f32[6,512], index: 0, kind: input, shape index: {}]   ;;  %s1978_s1 = inlined_call_operand.hbm [shape: f32[150,512], index: 1, kind: input, shape index: {}]   ;;  %s1979_s2 = inlined_call_operand.hbm [shape: f32[9,512], index: 2, kind: input, shape index: {}]   ;;  %s1980_s3 = inlined_call_operand.hbm [shape: f32[6,6], index: 3, kind: input, shape index: {}]   ;;  %s1981_s4 = inlined_call_operand.vmem [shape: f32[6,1], index: 4, kind: input, shape index: {}]   ;;  %s1982_s5 = inlined_call_operand.vmem [shape: f32[6,150], index: 5, kind: input, shape index: {}]   ;;  %s1983_s6 = inlined_call_operand.vmem [shape: f32[6,1], index: 6, kind: input, shape index: {}]   ;;  %s1984_s7 = inlined_call_operand.vmem [shape: f32[6,1], index: 7, kind: input, shape index: {}]   ;;  %s1985_s8 = inlined_call_operand.vmem [shape: f32[6,1], index: 8, kind: input, shape index: {}]   ;;  %s1986_s9 = inlined_call_operand.vmem [shape: f32[6,6], index: 9, kind: input, shape index: {}]   ;;  %s1987_s10 = inlined_call_operand.vmem [shape: f32[6,1], index: 10, kind: input, shape index: {}]   ;;  %s1988_s11 = inlined_call_operand.hbm [shape: f32[6,512], index: 11, kind: output, shape index: {}]  }
   0x1   :  { %2000 = sst [smem:[#allocation19_spill]] %s1978_s1 }
   0x2   :  { %2001 = sst [smem:[#allocation20_spill]] %s1980_s3 }
   0x3   :  { %2002 = sst [smem:[#allocation21_spill]] %s1981_s4 }
   0x4   :  { %2003 = sst [smem:[#allocation22_spill]] %s1986_s9 }
   0x5   :  { %2004 = sst [smem:[#allocation23_spill]] %s1987_s10 }
   0x6   :  { %2005 = sst [smem:[#allocation24_spill]] %s1988_s11 }
   0x7   :  { %16 = vsyncpa [#allocation3], 0 }
   0x8   :  { %18 = vsyncpa [#allocation3 + $0x1], 0 }
   0x9   :  { %19 = vsyncpa [#allocation6], 0 }
   0xa   :  { %21 = vsyncpa [#allocation6 + $0x1], 0 }
   0xb   :  { %22 = vsyncpa [#allocation4], 0 }
   0xc   :  { %24 = vsyncpa [#allocation4 + $0x1], 0  ;;  %s1555_s17 = smov 0   ;;  %s1557_s18 = smov 0  }
   0xd   :  { %s1559_s19 = smov 0   ;;  %s1561_s20 = smov 0  }
   0xe LB: > { %2006 = sst [smem:[#allocation13_spill]] %s1471_s17  ;;  %s1576_s21 = sadd.s32 4294967295, %s1483_s20   ;;  %s1483_s20 = sphi %s1561_s20, %s2035_s20   ;;  %s1479_s19 = sphi %s1559_s19, %s2037_s19   ;;  %s1475_s18 = sphi %s1557_s18, %s2039_s18   ;;  %s1471_s17 = sphi %s1555_s17, %s2038_s17  }
   0xf   : > { %2007 = sst [smem:[#allocation14_spill]] %s1479_s19  ;;  %s1207_s22 = sadd.s32 4294967294, %s1483_s20  }
  0x10   : > { %s1580_s23 = sadd.s32 1, %s1483_s20   ;;  %s63_s24 = sadd.s32 1, %s1479_s19 }
  0x11   : > { %2008 = sst [smem:[#allocation15_spill]] %s1580_s23  ;;  %s60_s25 = ssub.s32 %s1483_s20, %s1580_s23 }
  0x12   : > { %p70_p0 = scmp.ne.s32.totalorder %s1479_s19, %s1475_s18  ;;  %p61_p1 = scmp.eq.s32.totalorder %s60_s25, 0 }
  0x13   : > { %p71_p2 = scmp.eq.s32.totalorder %s1483_s20, 0  ;;  %p76_p3 = scmp.ne.s32.totalorder %s1475_s18, %s1471_s17 }
  0x14   : > { %p1989_p4 = scmp.eq.s32.totalorder %s1576_s21, 0  ;;  %p294_p7 = scmp.eq.s32.totalorder %s1576_s21, 1 }
  0x15   : > { %s1592_s26 = scalar_select %p61_p1, %s1479_s19, %s63_s24  }
  0x16   : > { %p1594_p5 = por %p71_p2, %p70_p0  ;;  %p1600_p6 = por %p1989_p4, %p76_p3 }
  0x17   : > { %2009 = sst [smem:[#allocation16_spill]] %s1592_s26  ;;  %p300_p8 = scmp.eq.s32.totalorder %s1207_s22, 1 }
  0x18   : > { %s2011_s28 = scalar_select %p1600_p6, 1, 0 }
  0x19   : > { %p1208_p9 = scmp.ge.s32.totalorder %s1483_s20, 1  ;;  %p307_p10 = scmp.lt.s32.totalorder %s1483_s20, 3 }
  0x1a   : > { %p1607_p11 = por %p294_p7, %p70_p0  ;;  %p1611_p12 = por %p300_p8, %p76_p3 }
  0x1b   : > { %p1615_p13 = pnand %p1208_p9, %p307_p10  ;;  %s1485_s13 = smov [#allocation7]  }
  0x1c   : > { %s2012_s29 = scalar_select %p1607_p11, 1, 0 }
  0x1d   : > { %s2014_s30 = scalar_select %p1611_p12, 1, 0 }
  0x1e   : > { %2013 = sst [smem:[#allocation17_spill]] %s2012_s29  ;;  %p1253_p2 = pneg %p1615_p13 }
  0x1f   : > { %2015 = sst [smem:[#allocation18_spill]] %s2014_s30  ;;  %s320_s14 = sshll.u32 %s1485_s13, 4  ;;  %s321_s14 = int_to_ptr.vmem [resolvable:$true] %s320_s14 }
  0x20   : > { %p1269_p4 = scmp.lt.s32.totalorder %s1483_s20, 2  ;;  %p2017_p0 = scmp.eq.s32.totalorder %s1576_s21, 0 }
  0x21   : > { %s1630_s16 = sand.u32 1, %s1479_s19   ;;  %s1340_s25 = scalar_lea.vmem %s321_s14, 128 }
  0x22   : > { %p1625_p7 = pnand %p1253_p2, %p2017_p0  ;;  %p1634_p3 = pnand %p1269_p4, %p1594_p5 }
  0x23   : > { %s1241_s24 = smul.u32 304, %s1630_s16  ;;  %p1341_p9 = scmp.ne.s32.totalorder %s321_s14, %s1340_s25 }
  0x24   : > { %p1331_p8 = pneg %p1625_p7  ;;  %p1348_p2 = scmp.lt.s32.totalorder %s321_s14, %s321_s14 }
  0x25   : > { %p1349_p0 = scmp.lt.s32.totalorder %s1340_s25, %s1340_s25 }
  0x26   : > { %p1343_p10 = pnand %p1341_p9, %p1331_p8 }
  0x27   : > { %p1350_p12 = por %p1349_p0, %p1348_p2 }
  0x28   : > { %p1344_p1 = pneg %p1343_p10 }
  0x2a   : > { %p1351_p11 = pnand %p1350_p12, %p1344_p1 }
  0x2c   : > { %1354 = shalt.err (!%p1351_p11)
}
  0x2d   : > { %s2020_s3 = sld [smem:[#allocation20_spill]]  ;;  %s1238_s26 = sshll.u32 %s1483_s20, 8 }
  0x2e   : > { %s365_s19 = scalar_lea.vmem [#allocation2], %s1241_s24  ;;  %s2021_s1 = sld [smem:[#allocation19_spill]] }
  0x2f   : > { %s372_s23 = sshll.u32 %s365_s19, 4  ;;  %s1657_s13 = scalar_lea.hbm %s1979_s2, %s1238_s26  ;;  %s1652_s23 = int_to_ptr.vmem [resolvable:$true] %s372_s23 }
  0x30   : > { %s362_s11 = scalar_lea.sflag [#allocation3], %s1630_s16  ;;  %p1357_p5 = pneg %p1634_p3 }
  0x33   : > { %1256 = dma.hbm_to_vmem [thread:$0]  (!%p1625_p7), %s2020_s3, 128, %s321_s14, [#allocation6]  }
  0x34   : > { %s1650_s25 = scalar_lea.hbm %s2021_s1, %s1238_s26  ;;  %s1360_s30 = scalar_lea.hbm %s2021_s1, 9728 }
  0x35   : > { %s1355_s14 = scalar_lea.hbm %s1650_s25, 4864  ;;  %p1361_p1 = scmp.lt.s32.totalorder %s1650_s25, %s2021_s1 }
  0x36   : > { %p1356_p4 = scmp.ne.s32.totalorder %s1650_s25, %s1355_s14  ;;  %p1362_p7 = scmp.lt.s32.totalorder %s1360_s30, %s1355_s14 }
  0x38   : > { %p1358_p11 = pnand %p1357_p5, %p1356_p4  ;;  %p1363_p8 = por %p1362_p7, %p1361_p1 }
  0x3a   : > { %p1359_p12 = pneg %p1358_p11 }
  0x3c   : > { %p1364_p9 = pnand %p1363_p8, %p1359_p12 }
  0x3e   : > { %1367 = shalt.err (!%p1364_p9)
}
  0x3f   : > { %s1368_s26 = scalar_lea.vmem %s1652_s23, 4864  ;;  %s1486_s15 = smov [#allocation2]  }
  0x40   : > { %p1369_p10 = scmp.ne.s32.totalorder %s1652_s23, %s1368_s26  ;;  %s1373_s27 = sshll.u32 %s1486_s15, 4  ;;  %s1374_s27 = int_to_ptr.vmem [resolvable:$false] %s1373_s27 }
  0x41   : > { %s1375_s17 = scalar_lea.vmem %s1374_s27, 9728  ;;  %p1376_p4 = scmp.lt.s32.totalorder %s1652_s23, %s1374_s27 }
  0x42   : > { %p1371_p2 = pnand %p1369_p10, %p1357_p5  ;;  %p1377_p11 = scmp.lt.s32.totalorder %s1375_s17, %s1368_s26 }
  0x44   : > { %p1372_p0 = pneg %p1371_p2  ;;  %p1378_p6 = por %p1377_p11, %p1376_p4 }
  0x46   : > { %p1379_p1 = pnand %p1378_p6, %p1372_p0 }
  0x48   : > { %1382 = shalt.err (!%p1379_p1)
}
  0x49   : > { %s1487_s3 = smov 512   ;;  %s1488_s14 = smov 256  }
  0x4a   : > { %s1489_s19 = smov 16   ;;  %s382_s30 = sand.u32 1, %s1483_s20  }
  0x4b   : > { %1260 = dma.hbm_to_vmem [thread:$0]  (!%p1634_p3), %s1650_s25, 4864, %s1652_s23, %s362_s11, %s1487_s3, %s1488_s14, %s1489_s19  }
  0x4c   : > { %s1213_s24 = sshll.u32 %s1630_s16, 5  ;;  %s383_s27 = scalar_lea.sflag [#allocation6], %s382_s30 }
  0x4d   : > { %s386_s26 = scalar_lea.vmem [#allocation5], %s1213_s24  ;;  %s1383_s17 = scalar_lea.hbm %s1657_s13, 512 }
  0x4e   : > { %s393_s15 = sshll.u32 %s386_s26, 4  ;;  %p1384_p6 = scmp.ne.s32.totalorder %s1657_s13, %s1383_s17  ;;  %s1691_s15 = int_to_ptr.vmem [resolvable:$true] %s393_s15 }
  0x4f   : > { %s1388_s9 = scalar_lea.hbm %s1979_s2, 1024  ;;  %p1389_p8 = scmp.lt.s32.totalorder %s1657_s13, %s1979_s2 }
  0x50   : > { %p1386_p12 = pnand %p1384_p6, %p1357_p5  ;;  %p1390_p9 = scmp.lt.s32.totalorder %s1388_s9, %s1383_s17 }
  0x52   : > { %p1387_p7 = pneg %p1386_p12  ;;  %p1391_p10 = por %p1390_p9, %p1389_p8 }
  0x54   : > { %p1392_p2 = pnand %p1391_p10, %p1387_p7 }
  0x56   : > { %1395 = shalt.err (!%p1392_p2)
}
  0x57   : > { %s1396_s11 = scalar_lea.vmem %s1691_s15, 512  ;;  %s1490_s1 = smov [#allocation5]  }
  0x58   : > { %p1397_p0 = scmp.ne.s32.totalorder %s1691_s15, %s1396_s11  ;;  %s1401_s23 = sshll.u32 %s1490_s1, 4  ;;  %s1402_s23 = int_to_ptr.vmem [resolvable:$false] %s1401_s23 }
  0x59   : > { %s1403_s29 = scalar_lea.vmem %s1402_s23, 1024  ;;  %p1404_p1 = scmp.lt.s32.totalorder %s1691_s15, %s1402_s23 }
  0x5a   : > { %p1399_p4 = pnand %p1397_p0, %p1357_p5  ;;  %p1405_p6 = scmp.lt.s32.totalorder %s1403_s29, %s1396_s11 }
  0x5c   : > { %p1400_p11 = pneg %p1399_p4  ;;  %p1406_p12 = por %p1405_p6, %p1404_p1 }
  0x5e   : > { %p1407_p8 = pnand %p1406_p12, %p1400_p11 }
  0x60   : > { %1410 = shalt.err (!%p1407_p8)
}
  0x61   : > { %1263 = dma.hbm_to_vmem [thread:$0]  (!%p1634_p3), %s1657_s13, 512, %s1691_s15, %s383_s27, %s1487_s3, %s1488_s14, %s1489_s19  }
  0x62   : > { %405 = sbr.rel (%p1615_p13) target bundleno = 418 (0x1a2), region = 64  ;;  %s1721_s4 = sand.u32 (!%p1615_p13), 1, %s1475_s18  }
  0x63   : > { %s1242_s9 = smul.u32 (!%p1615_p13), 304, %s1721_s4  ;;  %s408_s10 = scalar_lea.sflag (!%p1615_p13), [#allocation3], %s1721_s4 }
  0x64   : > { %p2022_p5 = scmp.ne.s32.totalorder (!%p1615_p13), %s2011_s28, 0 }
  0x65   : > { %s1725_s16 = scalar_lea.vmem (!%p1615_p13), [#allocation2], %s1242_s9 }
  0x67   : > { %1454 = dma.done.wait (%p2022_p5), %s408_s10, 4864  }
  0x68   : > { %1456 = vsyncadd (%p2022_p5), %s408_s10, 4294962432  ;;  %s416_s12 = sand.u32 1, %s1576_s21   ;;  %s1217_s22 = sshll.u32 %s1721_s4, 5 }
  0x69   : > { %s417_s25 = scalar_lea.sflag [#allocation6], %s416_s12  ;;  %s1733_s13 = scalar_lea.vmem [#allocation5], %s1217_s22 }
  0x6a   : > { %1458 = dma.done.wait (%p2022_p5), %s417_s25, 512  }
  0x6b   : > { %1460 = vsyncadd (%p2022_p5), %s417_s25, 4294966784  ;;  %p2023_p13 = scmp.eq.s32.totalorder %s1576_s21, 0 }
  0x6d   : > { %1462 = dma.done.wait (%p2023_p13), [#allocation6], 128   ;;  %p2024_p3 = pmov %p2023_p13 }
  0x6e   : > { %s1220_s3 = sshll.u32 %s1576_s21, 1  ;;  %v1491_v0 = vmov 0.0   ;;  %v1492_v1 = vmov 0   ;;  %v788_v2 = vlaneseq  ;;  %v515_v3 = vld [vmem:[%s1725_s16 + $0xf8] sm:$0xff]  ;;  %v514_v4 = vld [vmem:[%s1725_s16 + $0xf0] sm:$0xff]  ;;  %v1748_v5 = vld [vmem:[%s1725_s16 + $0xe8] sm:$0xff] }
  0x6f   : > { %1464 = vsyncadd (%p2024_p3), [#allocation6], 4294967168  ;;  %608 = vmatprep.mubr.f32.mxu0 %v1491_v0  ;;  %1311 = vset.pattern.permute.xlu0 %v1492_v1  ;;  %p474_p7 = scmp.lt.s32.totalorder %s1220_s3, 3  ;;  %v1753_v7 = vld [vmem:[%s1725_s16 + $0xe0] sm:$0xff]  ;;  %v1758_v8 = vld [vmem:[%s1725_s16 + $0xd8] sm:$0xff]  ;;  %vm537_vm0 = vcmask 1045504  }
  0x70   : > { %1312 = vset.pattern.permute.xlu1 %v1492_v1  ;;  %v1750_v6 = vshrl.u32 %v788_v2, 7  ;;  %647 = vmatprep.subr.mxu1 %v515_v3  ;;  %v1764_v11 = vld [vmem:[%s1725_s16 + $0xd0] sm:$0xff]  ;;  %v509_v12 = vld [vmem:[%s1725_s16 + $0xc8] sm:$0xff]  ;;  %v508_v14 = vld [vmem:[%s1725_s16 + $0xc0] sm:$0xff]  ;;  %vm533_vm1 = vcmask 48128   ;;  %vm637_vm2 = vcmask 179200  }
  0x71   : > { %s2041_s3 = smov (!%p474_p7, %s1220_s3), 3  ;;  %648 = vmatpush1.msra.mxu1 %v514_v4  ;;  %v1769_v13 = vld [vmem:[%s1733_s13 + $0x8] sm:$0xff]  ;;  %v1781_v20 = vld [vmem:[%s1733_s13] sm:$0xff]  ;;  %s2025_s10 = sld [smem:[#allocation21_spill]]  ;;  %vm987_vm3 = vcmask 1043456  }
  0x72   : > { %v932_v9 = vsub.s32 7, %v1750_v6  ;;  %v912_v10 = vsub.s32 6, %v1750_v6  ;;  %649 = vmatprep.subr.mxu1 %v1748_v5  ;;  %v882_v15 = vsub.s32 5, %v1750_v6  ;;  %s1221_s28 = sshll.u32 %s2041_s3, 3  ;;  %v507_v18 = vld [vmem:[%s1725_s16 + $0xb8] sm:$0xff]  ;;  %v842_v19 = vsub.s32 3, %v1750_v6 }
  0x73   : > { %650 = vmatpush1.msra.mxu1 %v1753_v7  ;;  %v506_v21 = vld [vmem:[%s1725_s16 + $0xb0] sm:$0xff]  ;;  %v862_v22 = vsub.s32 4, %v1750_v6  ;;  %v822_v23 = vsub.s32 2, %v1750_v6  ;;  %v505_v26 = vld [vmem:[%s1725_s16 + $0xa8] sm:$0xff]  ;;  %s477_s30 = scalar_lea.vmem %s1977_s0, %s1221_s28  ;;  %v504_v28 = vld [vmem:[%s1725_s16 + $0xa0] sm:$0xff]  ;;  %v790_v30 = vsub.s32 0, %v1750_v6 }
  0x74   : > { %651 = vmatprep.subr.mxu1 %v1758_v8  ;;  %v937_v16 = vrot.slane %v1769_v13, %v932_v9  ;;  %v917_v17 = vrot.slane %v1769_v13, %v912_v10  ;;  %v933_v24 = vrot.slane %v1781_v20, %v932_v9  ;;  %v913_v25 = vrot.slane %v1781_v20, %v912_v10  ;;  %v503_v33 = vld [vmem:[%s1725_s16 + $0x98] sm:$0xff]  ;;  %v1810_v38 = vld [vmem:[%s1725_s16 + $0x90] sm:$0xff]  ;;  %v501_v39 = vld [vmem:[%s1725_s16 + $0x88] sm:$0xff]  ;;  %s2026_s25 = sld [smem:[#allocation23_spill]]  ;;  %s1240_s24 = sshll.u32 %s1576_s21, 8 }
  0x75   : > { %652 = vmatpush1.msra.mxu1 %v1764_v11  ;;  %v887_v27 = vrot.slane %v1769_v13, %v882_v15  ;;  %v1795_v29 = vrot.slane %v1781_v20, %v882_v15  ;;  %v847_v34 = vrot.slane %v1769_v13, %v842_v19  ;;  %v802_v35 = vsub.s32 1, %v1750_v6  ;;  %v1815_v42 = vld [vmem:[%s477_s30 + $0x8] sm:$0x3f]  ;;  %v500_v45 = vld [vmem:[%s1725_s16 + $0x80] sm:$0xff]  ;;  %v498_v62 = vld [vmem:[%s1725_s16 + $0x70] sm:$0xff]  ;;  %s2027_s19 = sld [smem:[#allocation22_spill]] }
  0x76   : > { %653 = vmatprep.subr.mxu1 %v509_v12  ;;  %v1799_v31 = vadd.f32 %v937_v16, %v1758_v8  ;;  %v1801_v32 = vadd.f32 %v917_v17, %v509_v12  ;;  %v1806_v36 = vadd.f32 %v937_v16, %v509_v12  ;;  %v867_v37 = vrot.slane %v1769_v13, %v862_v22  ;;  %v497_v46 = vld [vmem:[%s1725_s16 + $0x68] sm:$0xff]  ;;  %v1827_v48 = vld [vmem:[%s477_s30] sm:$0x3f]  ;;  %v499_v58 = vld [vmem:[%s1725_s16 + $0x78] sm:$0xff]  ;;  %s2028_s30 = sld [smem:[#allocation17_spill]]  ;;  %s1079_s23 = scalar_lea.sflag [#allocation4], %s1721_s4 }
  0x77   : > { %654 = vmatpush1.msra.mxu1 %v508_v14  ;;  %v843_v40 = vrot.slane %v1781_v20, %v842_v19  ;;  %v827_v41 = vrot.slane %v1769_v13, %v822_v23  ;;  %v1818_v43 = vadd.f32 %v933_v24, %v1764_v11  ;;  %v1820_v44 = vadd.f32 %v913_v25, %v508_v14  ;;  %v496_v52 = vld [vmem:[%s1725_s16 + $0x60] sm:$0xff]  ;;  %v495_v59 = vld [vmem:[%s1725_s16 + $0x58] sm:$0xff]  ;;  %v493_v60 = vld [vmem:[%s1725_s16 + $0x48] sm:$0xff]  ;;  %s2029_s11 = sld [smem:[#allocation24_spill]]  ;;  %s1494_s21 = smov [#allocation8]  }
  0x78   : > { %655 = vmatprep.subr.mxu1 %v507_v18  ;;  %v823_v47 = vrot.slane %v1781_v20, %v822_v23  ;;  %1222 = vmatprep.subr.msk.mxu0 %vm537_vm0, %v1815_v42  ;;  %v1829_v49 = vadd.f32 %v933_v24, %v508_v14  ;;  %v1831_v50 = vadd.f32 %v887_v27, %v505_v26  ;;  %v526_v54 = vld [vmem:[#allocation7] sm:$0x3f]  ;;  %v630_v10 = vld [vmem:[%s1982_s5 + $0x8] sm:$0x3f]  ;;  %s1415_s9 = sshll.u32 %s1494_s21, 4  ;;  %s1416_s9 = int_to_ptr.vmem [resolvable:$false] %s1415_s9 }
  0x79   : > { %656 = vmatpush1.msra.mxu1 %v506_v21  ;;  %v1834_v51 = vadd.f32 %v1795_v29, %v504_v28  ;;  %v795_v53 = vrot.slane %v1769_v13, %v790_v30  ;;  %v1838_v55 = vadd.f32 %v887_v27, %v503_v33  ;;  %v863_v56 = vrot.slane %v1781_v20, %v862_v22  ;;  %v494_v2 = vld [vmem:[%s1725_s16 + $0x50] sm:$0xff]  ;;  %v492_v3 = vld [vmem:[%s1725_s16 + $0x40] sm:$0xff] }
  0x7a   : > { %657 = vmatprep.subr.mxu1 %v505_v26  ;;  %v1842_v57 = vadd.f32 %v847_v34, %v501_v39  ;;  %1223 = vmatpush1.msk.msra.mxu0 %vm537_vm0, %v1827_v48  ;;  %v1849_v61 = vadd.f32 %v843_v40, %v500_v45  ;;  %v829_v63 = vadd.f32 %v827_v41, %v497_v46  ;;  %v631_v15 = vld [vmem:[%s1983_s6] sm:$0x3f]  ;;  %v900_v24 = vrot.slane %v1831_v50, 2  ;;  %v491_v40 = vld [vmem:[%s1725_s16 + $0x38] sm:$0xff] }
  0x7b   : > { %658 = vmatpush1.msra.mxu1 %v504_v28  ;;  %v807_v1 = vrot.slane %v1769_v13, %v802_v35  ;;  %1224 = vmatmul.mubr.msk.f32.vlgmr.msra.gmra.mxu0 %vm533_vm1, %v526_v54  ;;  %v828_v4 = vadd.f32 %v823_v47, %v496_v52  ;;  %v791_v6 = vrot.slane %v1781_v20, %v790_v30  ;;  %v718_v23 = vld [vmem:[%s1984_s7] sm:$0x3f] }
  0x7c   : > { %659 = vmatprep.subr.mxu1 %v503_v33  ;;  %v803_v9 = vrot.slane %v1781_v20, %v802_v35  ;;  %1065 = vmatprep.mubr.f32.mxu0 %v1491_v0  ;;  %v799_v12 = vadd.f32 %v795_v53, %v495_v59  ;;  %v797_v13 = vadd.f32 %v795_v53, %v493_v60  ;;  %v726_v0 = vld [vmem:[%s1985_s8] sm:$0x3f]  ;;  %v833_v21 = vrot.slane %v829_v63, 4  ;;  %p2030_p10 = scmp.ne.s32.totalorder %s2028_s30, 0 }
  0x7d   : > { %660 = vmatpush1.msra.mxu1 %v1810_v38  ;;  %v809_v14 = vadd.f32 %v807_v1, %v495_v59  ;;  %1227 = vmatprep.mubr.msk.f32.mxu1 %vm637_vm2, %v630_v10  ;;  %v798_v16 = vadd.f32 %v791_v6, %v494_v2  ;;  %v796_v18 = vadd.f32 %v791_v6, %v492_v3  ;;  %v832_v26 = vrot.slane %v828_v4, 4  ;;  %v527_v28 = vld [vmem:[%s2025_s10] sm:$0x3f]  ;;  %s1091_s1 = scalar_lea.hbm %s2029_s11, %s1240_s24  ;;  %s1417_s10 = scalar_lea.vmem %s1416_s9, 512 }
  0x7e   : > { %661 = vmatprep.subr.mxu1 %v501_v39  ;;  %v808_v17 = vadd.f32 %v803_v9, %v494_v2  ;;  %634 = vperm.xlu0 %1311, %v631_v15   ;;  %v869_v19 = vadd.f32 %v867_v37, %v503_v33  ;;  %v888_v20 = vadd.f32 %v1795_v29, %v1810_v38  ;;  %v897_v29 = vrot.slane %v1834_v51, 2  ;;  %v490_v50 = vld [vmem:[%s1725_s16 + $0x30] sm:$0xff] }
  0x7f   : > { %662 = vmatpush1.msra.mxu1 %v500_v45  ;;  %v813_v22 = vrot.slane %v809_v14, 6  ;;  %729 = vperm.xlu1 %1312, %v726_v0   ;;  %v868_v25 = vadd.f32 %v863_v56, %v1810_v38  ;;  %v853_v30 = vrot.slane %v1842_v57, 6  ;;  %v899_v35 = vrot.slane %v1838_v55, 2  ;;  %v977_v51 = vld [vmem:[%s2026_s25] sm:$0x3f]  ;;  %v489_v56 = vld [vmem:[%s1725_s16 + $0x28] sm:$0xff] }
  0x80   : > { %663 = vmatprep.subr.mxu1 %v499_v58  ;;  %v812_v27 = vrot.slane %v808_v17, 6  ;;  %v852_v37 = vrot.slane %v1849_v61, 6  ;;  %v873_v41 = vrot.slane %v869_v19, 4  ;;  %v896_v45 = vrot.slane %v888_v20, 2  ;;  %v488_v61 = vld [vmem:[%s1725_s16 + $0x20] sm:$0xff]  ;;  %v486_v9 = vld [vmem:[%s1725_s16 + $0x10] sm:$0xff] }
  0x81   : > { %664 = vmatpush1.msra.mxu1 %v498_v62  ;;  %v819_v33 = vmax.f32 %v799_v12, %v813_v22  ;;  %v817_v34 = vmax.f32 %v797_v13, %v813_v22  ;;  %v872_v53 = vrot.slane %v868_v25, 4  ;;  %v923_v57 = vrot.slane %v1801_v32, 4  ;;  %v485_v14 = vld [vmem:[%s1725_s16 + $0x8] sm:$0xff]  ;;  %v1228_v13 = vld [vmem:[%s1733_s13 + $0x10] ss:$0 sm:$0xff] }
  0x82   : > { %665 = vmatprep.subr.mxu1 %v497_v46  ;;  %v818_v38 = vmax.f32 %v798_v16, %v812_v27  ;;  %v816_v39 = vmax.f32 %v796_v18, %v812_v27  ;;  %721 = vperm.xlu0 %1311, %v718_v23   ;;  %v949_v58 = vrot.slane %v1806_v36, 2  ;;  %v947_v62 = vrot.slane %v1818_v43, 2  ;;  %v484_v17 = vld [vmem:[%s1725_s16] sm:$0xff]  ;;  %v521_v20 = vld [vmem:[%s1725_s16 + $0x128] sm:$0x3f] }
  0x83   : > { %666 = vmatpush1.msra.mxu1 %v496_v52  ;;  %v839_v46 = vmax.f32 %v819_v33, %v833_v21  ;;  %v837_v47 = vmax.f32 %v817_v34, %v833_v21  ;;  %530 = vperm.xlu1 %1312, %v527_v28   ;;  %v950_v52 = vrot.slane %v1799_v31, 2  ;;  %v901_v31 = vsel %vm537_vm0, %v899_v35, %v900_v24  ;;  %v520_v22 = vld [vmem:[%s1725_s16 + $0x120] sm:$0x3f]  ;;  %v517_v35 = vld [vmem:[%s1725_s16 + $0x108] sm:$0xff] }
  0x84   : > { %667 = vmatprep.subr.mxu1 %v495_v59  ;;  %v838_v54 = vmax.f32 %v818_v38, %v832_v26  ;;  %v836_v55 = vmax.f32 %v816_v39, %v832_v26  ;;  %v946_v32 = vrot.slane %v1829_v49, 2  ;;  %v898_v36 = vsel %vm537_vm0, %v896_v45, %v897_v29  ;;  %v519_v26 = vld [vmem:[%s1725_s16 + $0x118] sm:$0xff]  ;;  %v516_v38 = vld [vmem:[%s1725_s16 + $0x100] sm:$0xff] }
  0x85   : > { %668 = vmatpush1.msra.mxu1 %v494_v2  ;;  %v859_v59 = vmax.f32 %v839_v46, %v853_v30  ;;  %v487_v2 = vld [vmem:[%s1725_s16 + $0x18] sm:$0xff]  ;;  %v922_v43 = vrot.slane %v1820_v44, 4  ;;  %v951_v18 = vsel %vm537_vm0, %v949_v58, %v950_v52  ;;  %v970_v25 = vadd.f32 %v1228_v13, %v1753_v7 }
  0x86   : > { %669 = vmatprep.subr.mxu1 %v493_v60  ;;  %v857_v60 = vmax.f32 %v837_v47, %v853_v30  ;;  %v858_v63 = vmax.f32 %v838_v54, %v852_v37  ;;  %v856_v1 = vmax.f32 %v836_v55, %v852_v37  ;;  %980 = vperm.xlu0 %1311, %v977_v51   ;;  %v518_v30 = vld [vmem:[%s1725_s16 + $0x110] sm:$0xff]  ;;  %s1219_s16 = sshll.u32 %s1721_s4, 4 }
  0x87   : > { %670 = vmatpush1.msra.mxu1 %v492_v3  ;;  %v1229_v3 = vld [vmem:[%s1733_s13 + $0x18] ss:$0 sm:$0xff]  ;;  %v879_v4 = vmax.f32 %v859_v59, %v873_v41  ;;  %v948_v21 = vsel %vm537_vm0, %v946_v32, %v947_v62  ;;  %v976_v51 = vld [vmem:[%s2027_s19] sm:$0x3f]  ;;  %s472_s26 = scalar_lea.vmem [#allocation8], %s1219_s16 }
  0x88   : > { %671 = vmatprep.subr.mxu1 %v491_v40  ;;  %v877_v6 = vmax.f32 %v857_v60, %v873_v41  ;;  %v878_v10 = vmax.f32 %v858_v63, %v872_v53  ;;  %v876_v12 = vmax.f32 %v856_v1, %v872_v53  ;;  %v971_v49 = vadd.f32 %v1229_v3, %v1748_v5  ;;  %v629_v40 = vld [vmem:[%s1982_s5] sm:$0x3f]  ;;  %s1093_s15 = sshll.u32 %s472_s26, 4  ;;  %s1094_s15 = int_to_ptr.vmem [resolvable:$true] %s1093_s15 }
  0x89   : > { %672 = vmatpush1.msra.mxu1 %v490_v50  ;;  %v909_v15 = vmax.f32 %v879_v4, %v900_v24  ;;  %v969_v44 = vadd.f32 %v1229_v3, %v1758_v8  ;;  %v968_v5 = vadd.f32 %v1228_v13, %v1764_v11  ;;  %s1411_s29 = scalar_lea.vmem %s1094_s15, 256  ;;  %p1418_p4 = scmp.lt.s32.totalorder %s1094_s15, %s1416_s9 }
  0x8a   : > { %673 = vmatprep.subr.mxu1 %v489_v56  ;;  %v907_v16 = vmax.f32 %v877_v6, %v901_v31  ;;  %v908_v0 = vmax.f32 %v878_v10, %v897_v29  ;;  %v906_v19 = vmax.f32 %v876_v12, %v898_v36  ;;  %p1412_p9 = scmp.ne.s32.totalorder %s1094_s15, %s1411_s29  ;;  %p1419_p11 = scmp.lt.s32.totalorder %s1417_s10, %s1411_s29 }
  0x8b   : > { %674 = vmatpush1.msra.mxu1 %v488_v61  ;;  %v929_v24 = vmax.f32 %v909_v15, %v923_v57 }
  0x8c   : > { %675 = vmatprep.subr.mxu1 %v487_v2  ;;  %v927_v23 = vmax.f32 %v907_v16, %v923_v57  ;;  %v926_v27 = vmax.f32 %v906_v19, %v922_v43  ;;  %v928_v28 = vmax.f32 %v908_v0, %v922_v43  ;;  %p1413_p2 = pnand %p1412_p9, %p2030_p10  ;;  %p1420_p1 = por %p1419_p11, %p1418_p4 }
  0x8d   : > { %676 = vmatpush1.msra.mxu1 %v486_v9  ;;  %v959_v8 = vmax.f32 %v929_v24, %v950_v52 }
  0x8e   : > { %677 = vmatprep.subr.mxu1 %v485_v14  ;;  %v957_v29 = vmax.f32 %v927_v23, %v951_v18  ;;  %v956_v33 = vmax.f32 %v926_v27, %v948_v21  ;;  %v958_v34 = vmax.f32 %v928_v28, %v947_v62  ;;  %p1414_p0 = pneg %p1413_p2 }
  0x8f   : > { %678 = vmatpush1.msra.mxu1 %v484_v17  ;;  %v975_v7 = vmax.f32 %v959_v8, %v971_v49 }
  0x90   : > { %1225 = vmatprep.subr.msk.mxu1 %vm537_vm0, %v521_v20  ;;  %v973_v37 = vmax.f32 %v957_v29, %v969_v44  ;;  %v972_v11 = vmax.f32 %v956_v33, %v968_v5  ;;  %v974_v39 = vmax.f32 %v958_v34, %v970_v25  ;;  %p1421_p6 = pnand %p1420_p1, %p1414_p0 }
  0x91   : > { %1226 = vmatpush2.msk.msra.mxu1 %vm537_vm0, %v520_v22  ;;  %v992_v45 = vrot.slane %v975_v7, 4 }
  0x92   : > { %707 = vmatprep.subr.mxu1 %v519_v26  ;;  %v991_v41 = vrot.slane %v973_v37, 4  ;;  %v988_v46 = vrot.slane %v972_v11, 4  ;;  %v989_v47 = vrot.slane %v974_v39, 4 }
  0x93   : > { %708 = vmatpush2.msra.mxu1 %v518_v30 }
  0x94   : > { %709 = vmatprep.subr.mxu1 %v517_v35  ;;  %v993_v50 = vsel %vm987_vm3, %v991_v41, %v992_v45  ;;  %v990_v52 = vsel %vm987_vm3, %v988_v46, %v989_v47 }
  0x95   : > { %710 = vmatpush2.msra.mxu1 %v516_v38  ;;  %1230 = vmatprep.subr.msk.mxu0 %vm537_vm0, %v993_v50 }
  0x96   : > { %712 = vmatmul.mubr.f32.vlgmr.msra.gmra.mxu1 %v629_v40  ;;  %1231 = vmatpush1.msk.msra.mxu0 %vm537_vm0, %v990_v52 }
  0x97   : > { %1232 = vmatmul.mubr.msk.f32.vlgmr.msra.gmra.mxu0 %vm533_vm1, %v976_v51 }
  0xf9   : > { %v635_v53 = vpop.permute.xlu0 %634 }
  0xfa   : > { %v730_v55 = vpop.permute.xlu1 %729 }
  0xfd   : > { %v722_v57 = vpop.permute.xlu0 %721 }
  0xfe   : > { %v531_v31 = vpop.permute.xlu1 %530 }
 0x13b   : > { %v610_v63 = vpop.f32.mrf.mxu0 }
 0x13c   : > { %v611_v36 = vadd.f32 %v610_v63, %v531_v31 }
 0x13d   : > { %v612_v4 = vpop.f32.mrf.mxu0 }
 0x13e   : > { %v613_v43 = vadd.f32 %v612_v4, %v531_v31  ;;  %v615_v14 = vsub.f32 0.0, %v611_v36 }
 0x140   : > { %v616_v15 = vsub.f32 0.0, %v613_v43  ;;  %v617_v16 = vmul.f32 1.442695, %v615_v14 }
 0x142   : > { %v619_v17 = vmul.f32 1.442695, %v616_v15 }
 0x156   : > { %v713_v54 = vpop.f32.mrf.mxu1 }
 0x157   : > { %v714_v56 = vadd.f32 %v713_v54, %v635_v53 }
 0x158   : > { %v715_v58 = vpop.f32.mrf.mxu1 }
 0x159   : > { %v724_v59 = vmul.f32 %v722_v57, %v714_v56  ;;  %v716_v60 = vadd.f32 %v715_v58, %v635_v53  ;;  %v1493_v53 = vmov -1.0   ;;  %v1067_v56 = vpop.f32.mrf.mxu0  ;;  %v981_v58 = vpop.permute.xlu0 %980 }
 0x15b   : > { %v1927_v61 = vadd.f32 %v730_v55, %v724_v59  ;;  %v725_v62 = vmul.f32 %v722_v57, %v716_v60  ;;  %v1069_v36 = vpop.f32.mrf.mxu0 }
 0x15d   : > { %v736_v1 = vmul.f32 0.70710677, %v1927_v61  ;;  %v1930_v2 = vadd.f32 %v730_v55, %v725_v62  ;;  %v734_v60 = vmul.f32 0.5, %v1927_v61 }
 0x15f   : > { %v742_v3 = vand.u32 2147483647, %v736_v1  ;;  %v1933_v32 = vmul.f32 0.70710677, %v1930_v2  ;;  %vm738_vm4 = vcmp.ge.f32.partialorder %v736_v1, 0.0 }
 0x160   : > { %v740_v54 = vsel %vm738_vm4, 1.0, %v1493_v53 }
 0x161   : > { %v744_v6 = vmul.f32 0.3275911, %v742_v3  ;;  %v743_v9 = vand.u32 2147483647, %v1933_v32  ;;  %v770_v49 = vsub.f32 0.0, %v742_v3  ;;  %vm739_vm5 = vcmp.ge.f32.partialorder %v1933_v32, 0.0 }
 0x162   : > { %v741_v31 = vsel %vm739_vm5, 1.0, %v1493_v53 }
 0x163   : > { %v746_v10 = vadd.f32 1.0, %v744_v6  ;;  %v745_v12 = vmul.f32 0.3275911, %v743_v9  ;;  %v771_v18 = vsub.f32 0.0, %v743_v9  ;;  %v772_v0 = vmul.f32 %v770_v49, %v742_v3 }
 0x164   : > { %v1068_v3 = vadd.f32 %v1067_v56, %v981_v58  ;;  %v735_v6 = vmul.f32 0.5, %v1930_v2 }
 0x165   : > { %1313 = vrcp.f32 %v746_v10  ;;  %v747_v13 = vadd.f32 1.0, %v745_v12  ;;  %v773_v20 = vmul.f32 %v771_v18, %v743_v9  ;;  %v774_v21 = vmul.f32 1.442695, %v772_v0 }
 0x166   : > { %v1070_v12 = vadd.f32 %v1069_v36, %v981_v58 }
 0x167   : > { %1315 = vrcp.f32 %v747_v13  ;;  %v776_v25 = vmul.f32 1.442695, %v773_v20 }
 0x168   : > { %1317 = vpow2.f32 %v617_v16 }
 0x169   : > { %1319 = vpow2.f32 %v619_v17 }
 0x16a   : > { %1321 = vpow2.f32 %v774_v21 }
 0x16b   : > { %1323 = vpow2.f32 %v776_v25 }
 0x172   : > { %v1314_v19 = vpop.eup %1313 }
 0x173   : > { %v752_v44 = vmul.f32 1.0614054, %v1314_v19 }
 0x174   : > { %v1316_v22 = vpop.eup %1315 }
 0x175   : > { %v754_v23 = vadd.f32 -1.4531521, %v752_v44  ;;  %v753_v24 = vmul.f32 1.0614054, %v1316_v22  ;;  %v1318_v26 = vpop.eup %1317 }
 0x176   : > { %v1320_v8 = vpop.eup %1319  ;;  %v621_v33 = vadd.f32 1.0, %v1318_v26 }
 0x177   : > { %v756_v5 = vmul.f32 %v1314_v19, %v754_v23  ;;  %v755_v27 = vadd.f32 -1.4531521, %v753_v24  ;;  %v622_v7 = vadd.f32 1.0, %v1320_v8  ;;  %v1322_v45 = vpop.eup %1321 }
 0x178   : > { %1325 = vrcp.f32 %v621_v33  ;;  %v1324_v51 = vpop.eup %1323 }
 0x179   : > { %v758_v28 = vadd.f32 1.4214138, %v756_v5  ;;  %v757_v29 = vmul.f32 %v1316_v22, %v755_v27  ;;  %1327 = vrcp.f32 %v622_v7 }
 0x17b   : > { %v760_v30 = vmul.f32 %v1314_v19, %v758_v28  ;;  %v759_v34 = vadd.f32 1.4214138, %v757_v29 }
 0x17d   : > { %v762_v35 = vadd.f32 -0.28449672, %v760_v30  ;;  %v761_v37 = vmul.f32 %v1316_v22, %v759_v34 }
 0x17f   : > { %v764_v38 = vmul.f32 %v1314_v19, %v762_v35  ;;  %v763_v11 = vadd.f32 -0.28449672, %v761_v37 }
 0x181   : > { %v766_v39 = vadd.f32 0.2548296, %v764_v38  ;;  %v765_v40 = vmul.f32 %v1316_v22, %v763_v11 }
 0x183   : > { %v768_v41 = vmul.f32 %v1314_v19, %v766_v39  ;;  %v767_v46 = vadd.f32 0.2548296, %v765_v40 }
 0x185   : > { %v778_v47 = vmul.f32 %v1322_v45, %v768_v41  ;;  %v769_v50 = vmul.f32 %v1316_v22, %v767_v46  ;;  %v1326_v63 = vpop.eup %1325 }
 0x186   : > { %v1328_v32 = vpop.eup %1327  ;;  %v627_v10 = vmul.f32 %v1326_v63, %v1827_v48 }
 0x187   : > { %v780_v52 = vsub.f32 1.0, %v778_v47  ;;  %v779_v55 = vmul.f32 %v1324_v51, %v769_v50  ;;  %v628_v15 = vmul.f32 %v1328_v32, %v1815_v42 }
 0x189   : > { %v782_v57 = vmul.f32 %v780_v52, %v740_v54  ;;  %v781_v59 = vsub.f32 1.0, %v779_v55 }
 0x18b   : > { %v784_v62 = vadd.f32 1.0, %v782_v57  ;;  %v783_v1 = vmul.f32 %v781_v59, %v741_v31 }
 0x18d   : > { %v786_v4 = vmul.f32 %v784_v62, %v734_v60  ;;  %v785_v9 = vadd.f32 1.0, %v783_v1 }
 0x18f   : > { %v1072_v43 = vadd.f32 %v1068_v3, %v786_v4  ;;  %v787_v61 = vmul.f32 %v785_v9, %v735_v6 }
 0x191   : > { %v1074_v14 = vadd.f32 %v1072_v43, %v627_v10  ;;  %v1073_v13 = vadd.f32 %v1070_v12, %v787_v61 }
 0x193   : > { %1076 = vst [vmem:[%s472_s26] sm:$0x3f] %v1074_v14  ;;  %v1075_v16 = vadd.f32 %v1073_v13, %v628_v15 }
 0x195   : > { %1077 = vst [vmem:[%s472_s26 + $0x8] sm:$0x3f] %v1075_v16 }
 0x196   : > { %1424 = shalt.err (!%p1421_p6)
}
 0x197   : > { %s1425_s12 = scalar_lea.hbm %s1091_s1, 256  ;;  %s1429_s25 = scalar_lea.hbm %s2029_s11, 512 }
 0x198   : > { %p1426_p12 = scmp.ne.s32.totalorder %s1091_s1, %s1425_s12  ;;  %p1430_p13 = scmp.lt.s32.totalorder %s1091_s1, %s2029_s11 }
 0x199   : > { %p1431_p3 = scmp.lt.s32.totalorder %s1429_s25, %s1425_s12 }
 0x19a   : > { %p1427_p8 = pnand %p1426_p12, %p2030_p10 }
 0x19b   : > { %p1432_p7 = por %p1431_p3, %p1430_p13 }
 0x19c   : > { %p1428_p5 = pneg %p1427_p8 }
 0x19e   : > { %p1433_p9 = pnand %p1432_p7, %p1428_p5 }
 0x1a0   : > { %1436 = shalt.err (!%p1433_p9)
}
 0x1a1   : > { %1251 = dma.vmem_to_hbm [thread:$0]  (%p2030_p10), %s1094_s15, 256, %s1091_s1, %s1079_s23  }
 0x1a2 PF: > { %s2031_s28 = sld [smem:[#allocation13_spill]]  ;;  %p2034_p0 = scmp.ge.s32.totalorder %s1483_s20, 2 }
 0x1a3   : > { %s2032_s14 = sld [smem:[#allocation18_spill]] }
 0x1a8   : > { %s1105_s19 = sand.u32 1, %s2031_s28  }
 0x1a9   : > { %p2033_p2 = scmp.ne.s32.totalorder %s2032_s14, 0  ;;  %s1106_s16 = scalar_lea.sflag [#allocation4], %s1105_s19 }
 0x1ab   : > { %p1265_p4 = pnand %p2034_p0, %p2033_p2 }
 0x1ad   : > { %p1266_p11 = pneg %p1265_p4 }
 0x1af   : > { %1466 = dma.done.wait (%p1266_p11), %s1106_s16, 256  }
 0x1b0   : > { %1468 = vsyncadd (%p1266_p11), %s1106_s16, 4294967040  ;;  %s2035_s20 = sld [smem:[#allocation15_spill]]  ;;  %s2038_s17 = smov %s1475_s18 }
 0x1b1   : > { %s2036_s24 = sld [smem:[#allocation14_spill]] }
 0x1b2   : > { %s2037_s19 = sld [smem:[#allocation16_spill]] }
 0x1b6   : > { %p27_p1 = scmp.ge.s32.totalorder %s2035_s20, 4  }
 0x1b7   : > { %s2039_s18 = smov %s2036_s24 }
 0x1b8   :  { %29 = sbr.rel (!%p27_p1) target bundleno = 14 (0xe), region = 129 }
 0x1bd   :  { %1111 = vsyncpa [#allocation3], 1 }
 0x1be   :  { %1113 = vsyncpa [#allocation3 + $0x1], 1 }
 0x1bf   :  { %1114 = vsyncpa [#allocation6], 1 }
 0x1c0   :  { %1116 = vsyncpa [#allocation6 + $0x1], 1 }
 0x1c1   :  { %1117 = vsyncpa [#allocation4], 1 }
 0x1c2   :  { %1119 = vsyncpa [#allocation4 + $0x1], 1 }

</bundles_post_ra>
